<compile_context>
chip_gen: v6e
topology: v6e:2x2x1
jax: 0.10.0
libtpu: 0.0.40
codegen_flags: <defaults>
</compile_context>

<pallas_src>
import jax
import jax.numpy as jnp
from jax.experimental import pallas as pl
from jax.experimental.pallas import tpu as pltpu


def dae_kernel(x_ref, w1_ref, b1_ref, w2_ref, b2_ref,
               w3_ref, b3_ref, w4_ref, b4_ref, o_ref):
    x = x_ref[...].astype(jnp.float32)

    # --- F.normalize(x, p=2, dim=1): x / max(||x||_2, 1e-12) ---
    sumsq = jnp.sum(x * x, axis=-1, keepdims=True)
    h = x * jax.lax.rsqrt(jnp.maximum(sumsq, 1e-24))   # EUP rsqrt; clamp == eps on the norm

    # Dropout(p=0.5) is identity in eval mode.
    # TODO(synk): training-mode dropout (pltpu.prng_random_bits mask + 1/(1-p) scale).

    # --- encoder (bf16 operands, f32 accumulation) ---
    h = jnp.dot(h.astype(jnp.bfloat16), w1_ref[...],
                preferred_element_type=jnp.float32) + b1_ref[...]
    h = jnp.maximum(h, 0.0)                                          # ReLU
    h = jnp.dot(h.astype(jnp.bfloat16), w2_ref[...],
                preferred_element_type=jnp.float32) + b2_ref[...]

    # --- decoder ---
    h = jnp.dot(h.astype(jnp.bfloat16), w3_ref[...],
                preferred_element_type=jnp.float32) + b3_ref[...]
    h = jnp.maximum(h, 0.0)                                          # ReLU
    h = jnp.dot(h.astype(jnp.bfloat16), w4_ref[...],
                preferred_element_type=jnp.float32) + b4_ref[...]

    o_ref[...] = h.astype(o_ref.dtype)


def _round_up(n, m):
    return ((n + m - 1) // m) * m


def _pad_axis(a, axis, target):
    pad = target - a.shape[axis]
    if pad == 0:
        return a
    widths = [(0, 0)] * a.ndim
    widths[axis] = (0, pad)
    return jnp.pad(a, widths)


def dae_forward(x, params):
    """x: [B, n_items] f32. params: dict of pre-transposed [in, out] weights, [1, out] biases."""
    B, n_items = x.shape
    w1, b1 = params["w1"], params["b1"]   # [n_items, d1], [1, d1]
    w2, b2 = params["w2"], params["b2"]   # [d1, d2],      [1, d2]
    w3, b3 = params["w3"], params["b3"]   # [d2, d1],      [1, d1]
    w4, b4 = params["w4"], params["b4"]   # [d1, n_items], [1, n_items]
    d1, d2 = w1.shape[1], w2.shape[1]

    # Lane-dense padding (exact: zero rows/cols + zero bias -> padded activations are 0).
    n_p = _round_up(n_items, 128)
    d1p = _round_up(d1, 128)
    d2p = _round_up(d2, 128)

    # Big batch tile: whole (padded) batch for small B, else 256 per step.
    tb = min(256, _round_up(B, 8))
    B_p = _round_up(B, tb)

    xp = _pad_axis(_pad_axis(x, 1, n_p), 0, B_p)

    to_bf16 = lambda a: a.astype(jnp.bfloat16)
    w1p = to_bf16(_pad_axis(_pad_axis(w1, 0, n_p), 1, d1p))
    w2p = to_bf16(_pad_axis(_pad_axis(w2, 0, d1p), 1, d2p))
    w3p = to_bf16(_pad_axis(_pad_axis(w3, 0, d2p), 1, d1p))
    w4p = to_bf16(_pad_axis(_pad_axis(w4, 0, d1p), 1, n_p))
    b1p = _pad_axis(b1, 1, d1p).astype(jnp.float32)
    b2p = _pad_axis(b2, 1, d2p).astype(jnp.float32)
    b3p = _pad_axis(b3, 1, d1p).astype(jnp.float32)
    b4p = _pad_axis(b4, 1, n_p).astype(jnp.float32)

    # Constant index_map -> weights/biases stay resident in VMEM across batch tiles.
    full = lambda a: pl.BlockSpec(a.shape, lambda i: (0,) * a.ndim)

    flops = 2 * B_p * (n_p * d1p + d1p * d2p + d2p * d1p + d1p * n_p)
    bytes_accessed = (
        xp.size * 4 + B_p * n_p * 4                        # input + output (f32)
        + (w1p.size + w2p.size + w3p.size + w4p.size) * 2  # bf16 weights
        + (b1p.size + b2p.size + b3p.size + b4p.size) * 4  # f32 biases
    )

    # TODO(synk): for recommender-scale n_items (>~10k), tile w1 over K (reduction axis +
    # f32 accumulator) and w4/output over N, and raise vmem_limit_bytes, so v7x's 64 MiB
    # VMEM does not overflow; not needed at these sizes.
    out_p = pl.pallas_call(
        dae_kernel,
        out_shape=jax.ShapeDtypeStruct((B_p, n_p), x.dtype),
        grid_spec=pltpu.PrefetchScalarGridSpec(
            num_scalar_prefetch=0,
            grid=(B_p // tb,),
            in_specs=[
                pl.BlockSpec((tb, n_p), lambda i: (i, 0)),   # x tile
                full(w1p), full(b1p),
                full(w2p), full(b2p),
                full(w3p), full(b3p),
                full(w4p), full(b4p),
            ],
            out_specs=pl.BlockSpec((tb, n_p), lambda i: (i, 0)),
        ),
        compiler_params=pltpu.CompilerParams(
            dimension_semantics=("parallel",)),
        cost_estimate=pl.CostEstimate(
            flops=flops, transcendentals=B_p, bytes_accessed=bytes_accessed),
    )(xp, w1p, b1p, w2p, b2p, w3p, b3p, w4p, b4p)

    return out_p[:B, :n_items]


def init_params(key, n_items, d1, d2):
    """Deterministic init mimicking nn.Linear's U(-1/sqrt(fan_in), 1/sqrt(fan_in)).
    Weights stored pre-transposed as [in, out]; biases as [1, out]."""
    def linear(k, fan_in, fan_out):
        kw, kb = jax.random.split(k)
        bound = 1.0 / jnp.sqrt(fan_in)
        w = jax.random.uniform(kw, (fan_in, fan_out), jnp.float32, -bound, bound)
        b = jax.random.uniform(kb, (1, fan_out), jnp.float32, -bound, bound)
        return w, b

    k1, k2, k3, k4 = jax.random.split(key, 4)
    w1, b1 = linear(k1, n_items, d1)   # encoder layer 1
    w2, b2 = linear(k2, d1, d2)        # encoder layer 2
    w3, b3 = linear(k3, d2, d1)        # decoder layer 1
    w4, b4 = linear(k4, d1, n_items)   # decoder layer 2
    return dict(w1=w1, b1=b1, w2=w2, b2=b2, w3=w3, b3=b3, w4=w4, b4=b4)


def dae_reference(x, p):
    """Pure-JAX f32 reference matching the PyTorch module exactly (eval mode)."""
    norm = jnp.sqrt(jnp.sum(x * x, axis=-1, keepdims=True))
    h = x / jnp.maximum(norm, 1e-12)
    h = jnp.maximum(h @ p["w1"] + p["b1"], 0.0)
    h = h @ p["w2"] + p["b2"]
    h = jnp.maximum(h @ p["w3"] + p["b3"], 0.0)
    h = h @ p["w4"] + p["b4"]
    return h


if __name__ == "__main__":
    # encoder_dims = [n_items, dim1, dim2]; decoder_dims = reversed
    B, n_items, d1, d2 = 16, 256, 128, 64

    key = jax.random.PRNGKey(0)
    kx, kp = jax.random.split(key)
    x = jax.random.normal(kx, (B, n_items), jnp.float32)
    params = init_params(kp, n_items, d1, d2)

    out = dae_forward(x, params)
    out = jax.block_until_ready(out)

    ref = dae_reference(x, params)
    assert out.shape == (B, n_items)
    # bf16 dot operands with f32 accumulation -> loosened tolerance.
    assert jnp.allclose(out, ref, atol=1e-2, rtol=1e-2), float(jnp.max(jnp.abs(out - ref)))

    print("KERNEL_OK")
</pallas_src>

<mosaic_0001>
module attributes {stable_mosaic.version = 11 : i64} {
  func.func @dae_kernel(%arg0: i32, %arg1: memref<16x256xf32, #tpu.memory_space<vmem>>, %arg2: memref<256x128xbf16, #tpu.memory_space<vmem>>, %arg3: memref<1x128xf32, #tpu.memory_space<vmem>>, %arg4: memref<128x128xbf16, #tpu.memory_space<vmem>>, %arg5: memref<1x128xf32, #tpu.memory_space<vmem>>, %arg6: memref<128x128xbf16, #tpu.memory_space<vmem>>, %arg7: memref<1x128xf32, #tpu.memory_space<vmem>>, %arg8: memref<128x256xbf16, #tpu.memory_space<vmem>>, %arg9: memref<1x256xf32, #tpu.memory_space<vmem>>, %arg10: memref<16x256xf32, #tpu.memory_space<vmem>>) attributes {dimension_semantics = [#tpu.dimension_semantics<parallel>], iteration_bounds = array<i64: 1>, scalar_prefetch = 0 : i64, scratch_operands = 0 : i64, tpu.core_type = #tpu.core_type<tc>, window_params = [{transform_indices = @transform_0, window_bounds = array<i64: 16, 256>}, {pipeline_mode = #tpu.pipeline_mode<synchronous>, transform_indices = @transform_1, window_bounds = array<i64: 256, 128>}, {pipeline_mode = #tpu.pipeline_mode<synchronous>, transform_indices = @transform_2, window_bounds = array<i64: 1, 128>}, {pipeline_mode = #tpu.pipeline_mode<synchronous>, transform_indices = @transform_3, window_bounds = array<i64: 128, 128>}, {pipeline_mode = #tpu.pipeline_mode<synchronous>, transform_indices = @transform_4, window_bounds = array<i64: 1, 128>}, {pipeline_mode = #tpu.pipeline_mode<synchronous>, transform_indices = @transform_5, window_bounds = array<i64: 128, 128>}, {pipeline_mode = #tpu.pipeline_mode<synchronous>, transform_indices = @transform_6, window_bounds = array<i64: 1, 128>}, {pipeline_mode = #tpu.pipeline_mode<synchronous>, transform_indices = @transform_7, window_bounds = array<i64: 128, 256>}, {pipeline_mode = #tpu.pipeline_mode<synchronous>, transform_indices = @transform_8, window_bounds = array<i64: 1, 256>}, {transform_indices = @transform_9, window_bounds = array<i64: 16, 256>}]} {
    %c0 = arith.constant 0 : index
    %c0_0 = arith.constant 0 : index
    %0 = vector.load %arg1[%c0, %c0_0] : memref<16x256xf32, #tpu.memory_space<vmem>>, vector<16x256xf32>
    %1 = arith.mulf %0, %0 : vector<16x256xf32>
    %cst = arith.constant dense<0.000000e+00> : vector<16xf32>
    %2 = vector.multi_reduction <add>, %1, %cst [1] : vector<16x256xf32> to vector<16xf32>
    %3 = vector.shape_cast %2 : vector<16xf32> to vector<16x1xf32>
    %cst_1 = arith.constant 1.000000e-24 : f32
    %4 = vector.broadcast %cst_1 : f32 to vector<16x1xf32>
    %5 = arith.maximumf %3, %4 : vector<16x1xf32>
    %6 = math.rsqrt %5 : vector<16x1xf32>
    %7 = vector.broadcast %6 : vector<16x1xf32> to vector<16x256xf32>
    %8 = arith.mulf %0, %7 : vector<16x256xf32>
    %9 = arith.truncf %8 : vector<16x256xf32> to vector<16x256xbf16>
    %c0_2 = arith.constant 0 : index
    %c0_3 = arith.constant 0 : index
    %10 = vector.load %arg2[%c0_2, %c0_3] : memref<256x128xbf16, #tpu.memory_space<vmem>>, vector<256x128xbf16>
    %cst_4 = arith.constant dense<0.000000e+00> : vector<16x128xf32>
    %11 = tpu.matmul %9, %10, %cst_4 {dimension_numbers = #tpu.dot_dimension_numbers<[1], [0], [0], [1], [0, 0, 1, 1], [], []>} : vector<16x256xbf16>, vector<256x128xbf16>, vector<16x128xf32> -> vector<16x128xf32>
    %c0_5 = arith.constant 0 : index
    %c0_6 = arith.constant 0 : index
    %12 = vector.load %arg3[%c0_5, %c0_6] : memref<1x128xf32, #tpu.memory_space<vmem>>, vector<1x128xf32>
    %13 = vector.broadcast %12 : vector<1x128xf32> to vector<16x128xf32>
    %14 = arith.addf %11, %13 : vector<16x128xf32>
    %cst_7 = arith.constant 0.000000e+00 : f32
    %15 = vector.broadcast %cst_7 : f32 to vector<16x128xf32>
    %16 = arith.maximumf %14, %15 : vector<16x128xf32>
    %17 = arith.truncf %16 : vector<16x128xf32> to vector<16x128xbf16>
    %c0_8 = arith.constant 0 : index
    %c0_9 = arith.constant 0 : index
    %18 = vector.load %arg4[%c0_8, %c0_9] : memref<128x128xbf16, #tpu.memory_space<vmem>>, vector<128x128xbf16>
    %cst_10 = arith.constant dense<0.000000e+00> : vector<16x128xf32>
    %19 = tpu.matmul %17, %18, %cst_10 {dimension_numbers = #tpu.dot_dimension_numbers<[1], [0], [0], [1], [0, 0, 1, 1], [], []>} : vector<16x128xbf16>, vector<128x128xbf16>, vector<16x128xf32> -> vector<16x128xf32>
    %c0_11 = arith.constant 0 : index
    %c0_12 = arith.constant 0 : index
    %20 = vector.load %arg5[%c0_11, %c0_12] : memref<1x128xf32, #tpu.memory_space<vmem>>, vector<1x128xf32>
    %21 = vector.broadcast %20 : vector<1x128xf32> to vector<16x128xf32>
    %22 = arith.addf %19, %21 : vector<16x128xf32>
    %23 = arith.truncf %22 : vector<16x128xf32> to vector<16x128xbf16>
    %c0_13 = arith.constant 0 : index
    %c0_14 = arith.constant 0 : index
    %24 = vector.load %arg6[%c0_13, %c0_14] : memref<128x128xbf16, #tpu.memory_space<vmem>>, vector<128x128xbf16>
    %cst_15 = arith.constant dense<0.000000e+00> : vector<16x128xf32>
    %25 = tpu.matmul %23, %24, %cst_15 {dimension_numbers = #tpu.dot_dimension_numbers<[1], [0], [0], [1], [0, 0, 1, 1], [], []>} : vector<16x128xbf16>, vector<128x128xbf16>, vector<16x128xf32> -> vector<16x128xf32>
    %c0_16 = arith.constant 0 : index
    %c0_17 = arith.constant 0 : index
    %26 = vector.load %arg7[%c0_16, %c0_17] : memref<1x128xf32, #tpu.memory_space<vmem>>, vector<1x128xf32>
    %27 = vector.broadcast %26 : vector<1x128xf32> to vector<16x128xf32>
    %28 = arith.addf %25, %27 : vector<16x128xf32>
    %cst_18 = arith.constant 0.000000e+00 : f32
    %29 = vector.broadcast %cst_18 : f32 to vector<16x128xf32>
    %30 = arith.maximumf %28, %29 : vector<16x128xf32>
    %31 = arith.truncf %30 : vector<16x128xf32> to vector<16x128xbf16>
    %c0_19 = arith.constant 0 : index
    %c0_20 = arith.constant 0 : index
    %32 = vector.load %arg8[%c0_19, %c0_20] : memref<128x256xbf16, #tpu.memory_space<vmem>>, vector<128x256xbf16>
    %cst_21 = arith.constant dense<0.000000e+00> : vector<16x256xf32>
    %33 = tpu.matmul %31, %32, %cst_21 {dimension_numbers = #tpu.dot_dimension_numbers<[1], [0], [0], [1], [0, 0, 1, 1], [], []>} : vector<16x128xbf16>, vector<128x256xbf16>, vector<16x256xf32> -> vector<16x256xf32>
    %c0_22 = arith.constant 0 : index
    %c0_23 = arith.constant 0 : index
    %34 = vector.load %arg9[%c0_22, %c0_23] : memref<1x256xf32, #tpu.memory_space<vmem>>, vector<1x256xf32>
    %35 = vector.broadcast %34 : vector<1x256xf32> to vector<16x256xf32>
    %36 = arith.addf %33, %35 : vector<16x256xf32>
    %c0_24 = arith.constant 0 : index
    %c0_25 = arith.constant 0 : index
    %37 = vector.load %arg10[%c0_24, %c0_25] : memref<16x256xf32, #tpu.memory_space<vmem>>, vector<16x256xf32>
    tpu.vector_store %arg10[%c0_24, %c0_25], %36 {strides = array<i32>} : memref<16x256xf32, #tpu.memory_space<vmem>>, vector<16x256xf32>,
    return
  }
  func.func @transform_0(%arg0: i32) -> (i32, i32) {
    %c0_i32 = arith.constant 0 : i32
    %c0_i32_0 = arith.constant 0 : i32
    return %arg0, %c0_i32 : i32, i32
  }
  func.func @transform_1(%arg0: i32) -> (i32, i32) {
    %c0_i32 = arith.constant 0 : i32
    %c0_i32_0 = arith.constant 0 : i32
    %c0_i32_1 = arith.constant 0 : i32
    return %c0_i32, %c0_i32_0 : i32, i32
  }
  func.func @transform_2(%arg0: i32) -> (i32, i32) {
    %c0_i32 = arith.constant 0 : i32
    %c0_i32_0 = arith.constant 0 : i32
    %c0_i32_1 = arith.constant 0 : i32
    return %c0_i32, %c0_i32_0 : i32, i32
  }
  func.func @transform_3(%arg0: i32) -> (i32, i32) {
    %c0_i32 = arith.constant 0 : i32
    %c0_i32_0 = arith.constant 0 : i32
    %c0_i32_1 = arith.constant 0 : i32
    return %c0_i32, %c0_i32_0 : i32, i32
  }
  func.func @transform_4(%arg0: i32) -> (i32, i32) {
    %c0_i32 = arith.constant 0 : i32
    %c0_i32_0 = arith.constant 0 : i32
    %c0_i32_1 = arith.constant 0 : i32
    return %c0_i32, %c0_i32_0 : i32, i32
  }
  func.func @transform_5(%arg0: i32) -> (i32, i32) {
    %c0_i32 = arith.constant 0 : i32
    %c0_i32_0 = arith.constant 0 : i32
    %c0_i32_1 = arith.constant 0 : i32
    return %c0_i32, %c0_i32_0 : i32, i32
  }
  func.func @transform_6(%arg0: i32) -> (i32, i32) {
    %c0_i32 = arith.constant 0 : i32
    %c0_i32_0 = arith.constant 0 : i32
    %c0_i32_1 = arith.constant 0 : i32
    return %c0_i32, %c0_i32_0 : i32, i32
  }
  func.func @transform_7(%arg0: i32) -> (i32, i32) {
    %c0_i32 = arith.constant 0 : i32
    %c0_i32_0 = arith.constant 0 : i32
    %c0_i32_1 = arith.constant 0 : i32
    return %c0_i32, %c0_i32_0 : i32, i32
  }
  func.func @transform_8(%arg0: i32) -> (i32, i32) {
    %c0_i32 = arith.constant 0 : i32
    %c0_i32_0 = arith.constant 0 : i32
    %c0_i32_1 = arith.constant 0 : i32
    return %c0_i32, %c0_i32_0 : i32, i32
  }
  func.func @transform_9(%arg0: i32) -> (i32, i32) {
    %c0_i32 = arith.constant 0 : i32
    %c0_i32_0 = arith.constant 0 : i32
    return %arg0, %c0_i32 : i32, i32
  }
}

</mosaic_0001>

<bundles_post_ra>
// kernel: tpu_custom_call.1
= control target key start
LH: loop header
LB: loop body
LE: loop exit
PB: predicated region body
PF: predicated region fallthrough
CT: control target
= control target key end

     0   :  { %14 = vsyncpa [#allocation3], 0  ;;  %s1189_s0 = inlined_call_operand.hbm [shape: f32[16,256], index: 0, kind: input, shape index: {}]   ;;  %s1190_s1 = inlined_call_operand.hbm [shape: bf16[256,128], index: 1, kind: input, shape index: {}]   ;;  %s1191_s2 = inlined_call_operand.vmem [shape: f32[1,128], index: 2, kind: input, shape index: {}]   ;;  %s1192_s3 = inlined_call_operand.hbm [shape: bf16[128,128], index: 3, kind: input, shape index: {}]   ;;  %s1193_s4 = inlined_call_operand.vmem [shape: f32[1,128], index: 4, kind: input, shape index: {}]   ;;  %s1194_s5 = inlined_call_operand.hbm [shape: bf16[128,128], index: 5, kind: input, shape index: {}]   ;;  %s1195_s6 = inlined_call_operand.vmem [shape: f32[1,128], index: 6, kind: input, shape index: {}]   ;;  %s1196_s7 = inlined_call_operand.hbm [shape: bf16[128,256], index: 7, kind: input, shape index: {}]   ;;  %s1197_s8 = inlined_call_operand.vmem [shape: f32[1,256], index: 8, kind: input, shape index: {}]   ;;  %s1198_s9 = inlined_call_operand.hbm [shape: f32[16,256], index: 9, kind: output, shape index: {}]  }
   0x1   :  { %15 = vsyncpa [#allocation6], 0 }
   0x2   :  { %16 = vsyncpa [#allocation9], 0 }
   0x3   :  { %17 = vsyncpa [#allocation4], 0  ;;  %s1041_s30 = smov [#allocation5]  }
   0x4   :  { %s35_s10 = sshll.u32 %s1041_s30, 4  ;;  %s36_s10 = int_to_ptr.vmem [resolvable:$true] %s35_s10 }
   0x5   :  { %s921_s11 = scalar_lea.vmem %s36_s10, 2048  ;;  %p926_p1 = scmp.lt.s32.totalorder %s36_s10, %s36_s10 }
   0x6   :  { %p922_p0 = scmp.ne.s32.totalorder %s36_s10, %s921_s11  ;;  %p927_p2 = scmp.lt.s32.totalorder %s921_s11, %s921_s11 }
   0x8   :  { %p928_p3 = por %p927_p2, %p926_p1 }
   0xa   :  { %p929_p4 = pnand %p928_p3, %p922_p0 }
   0xc   :  { %932 = shalt.err (!%p929_p4)
}
   0xd   :  { %s1042_s12 = smov 64   ;;  %s1043_s13 = smov 4  }
   0xe   :  { %41 = dma.hbm_to_vmem [thread:$0]  %s1190_s1, 2048, %s36_s10, [#allocation6], %s1042_s12, %s1042_s12, %s1043_s13  }
   0xf   :  { %s1044_s16 = smov [#allocation8]   ;;  %s1045_s18 = smov [#allocation2]  }
  0x10   :  { %s63_s17 = sshll.u32 %s1044_s16, 4  ;;  %s23_s19 = sshll.u32 %s1045_s18, 4  ;;  %s64_s17 = int_to_ptr.vmem [resolvable:$true] %s63_s17  ;;  %s24_s19 = int_to_ptr.vmem [resolvable:$true] %s23_s19 }
  0x11   :  { %s941_s20 = scalar_lea.vmem %s64_s17, 1024  ;;  %p946_p6 = scmp.lt.s32.totalorder %s64_s17, %s64_s17 }
  0x12   :  { %p942_p5 = scmp.ne.s32.totalorder %s64_s17, %s941_s20  ;;  %p947_p7 = scmp.lt.s32.totalorder %s941_s20, %s941_s20 }
  0x14   :  { %p948_p8 = por %p947_p7, %p946_p6 }
  0x16   :  { %p949_p9 = pnand %p948_p8, %p942_p5 }
  0x18   :  { %952 = shalt.err (!%p949_p9)
}
  0x19   :  { %69 = dma.hbm_to_vmem [thread:$0]  %s1194_s5, 1024, %s64_s17, [#allocation9], %s1042_s12, %s1042_s12, %s1043_s13  }
  0x1a   :  { %s961_s1 = scalar_lea.vmem %s24_s19, 512  ;;  %p966_p11 = scmp.lt.s32.totalorder %s24_s19, %s24_s19 }
  0x1b   :  { %p962_p10 = scmp.ne.s32.totalorder %s24_s19, %s961_s1  ;;  %p967_p12 = scmp.lt.s32.totalorder %s961_s1, %s961_s1 }
  0x1d   :  { %p968_p13 = por %p967_p12, %p966_p11 }
  0x1f   :  { %p969_p0 = pnand %p968_p13, %p962_p10 }
  0x21   :  { %972 = shalt.err (!%p969_p0)
}
  0x22   :  { %s1046_s23 = smov 256   ;;  %s1047_s24 = smov 16  }
  0x23   :  { %29 = dma.hbm_to_vmem [thread:$0]  %s1189_s0, 512, %s24_s19, [#allocation3], %s1046_s23, %s1046_s23, %s1047_s24  }
  0x24   :  { %s1048_s27 = smov [#allocation7]   ;;  %s1049_s5 = smov [#allocation10]  }
  0x25   :  { %s49_s28 = sshll.u32 %s1048_s27, 4  ;;  %s77_s29 = sshll.u32 %s1049_s5, 4  ;;  %s50_s28 = int_to_ptr.vmem [resolvable:$true] %s49_s28  ;;  %s78_s29 = int_to_ptr.vmem [resolvable:$true] %s77_s29 }
  0x26   :  { %s981_s30 = scalar_lea.vmem %s50_s28, 1024  ;;  %p986_p2 = scmp.lt.s32.totalorder %s50_s28, %s50_s28 }
  0x27   :  { %p982_p1 = scmp.ne.s32.totalorder %s50_s28, %s981_s30  ;;  %p987_p3 = scmp.lt.s32.totalorder %s981_s30, %s981_s30 }
  0x29   :  { %p988_p4 = por %p987_p3, %p986_p2 }
  0x2b   :  { %p989_p5 = pnand %p988_p4, %p982_p1 }
  0x2d   :  { %992 = shalt.err (!%p989_p5)
}
  0x2e   :  { %55 = dma.hbm_to_vmem [thread:$0]  %s1192_s3, 1024, %s50_s28, [#allocation6], %s1042_s12, %s1042_s12, %s1043_s13  }
  0x2f   :  { %s1001_s0 = scalar_lea.vmem %s78_s29, 2048  ;;  %p1006_p7 = scmp.lt.s32.totalorder %s78_s29, %s78_s29 }
  0x30   :  { %p1002_p6 = scmp.ne.s32.totalorder %s78_s29, %s1001_s0  ;;  %p1007_p8 = scmp.lt.s32.totalorder %s1001_s0, %s1001_s0 }
  0x32   :  { %p1008_p9 = por %p1007_p8, %p1006_p7 }
  0x34   :  { %p1009_p10 = pnand %p1008_p9, %p1002_p6 }
  0x36   :  { %1012 = shalt.err (!%p1009_p10)
}
  0x37   :  { %s1050_s14 = smov 128   ;;  %s1051_s15 = smov 8  }
  0x38   :  { %83 = dma.hbm_to_vmem [thread:$0]  %s1196_s7, 2048, %s78_s29, [#allocation9], %s1050_s14, %s1050_s14, %s1051_s15  }
  0x39   :  { %1033 = dma.done.wait [#allocation3], 512  }
  0x3a   :  { %1034 = vsyncadd [#allocation3], 4294966784 }
  0x3b   :  { %1035 = dma.done.wait [#allocation6], 3072  }
  0x3c   :  { %1036 = vsyncadd [#allocation6], 4294964224 }
  0x3d   :  { %1037 = dma.done.wait [#allocation9], 3072  }
  0x3e   :  { %1038 = vsyncadd [#allocation9], 4294964224  ;;  %v1133_v0 = vld [vmem:[#allocation2] sm:$0xff]  ;;  %v1135_v1 = vld [vmem:[#allocation2 + $0x8] sm:$0xff]  ;;  %v1052_v27 = vmov 0.0   ;;  %vm1053_vm0 = vmmov 0  }
  0x3f   :  { %v1137_v2 = vld [vmem:[#allocation2 + $0x10] sm:$0xff]  ;;  %v106_v3 = vmul.f32 %v1133_v0, %v1133_v0  ;;  %v107_v4 = vmul.f32 %v1135_v1, %v1135_v1  ;;  %v1143_v5 = vld [vmem:[#allocation2 + $0x18] sm:$0xff]  ;;  %v857_v14 = vld [vmem:[#allocation5 + $0x68] sm:$0xff]   ;;  %798 = vmatprep.subr.bf16.mxu1 %v1052_v27  ;;  %814 = vmatprep.mubr.msk.bf16.mxu1 %vm1053_vm0, %v1052_v27 }
  0x40   :  { %v108_v6 = vmul.f32 %v1137_v2, %v1137_v2  ;;  %v109_v7 = vmul.f32 %v1143_v5, %v1143_v5  ;;  %v853_v8 = vld [vmem:[#allocation5 + $0x78] sm:$0xff]   ;;  %v855_v11 = vld [vmem:[#allocation5 + $0x70] sm:$0xff]   ;;  %v858_v15 = vld [vmem:[#allocation5 + $0x28] sm:$0xff]  }
  0x41   :  { %v110_v9 = vadd.f32 %v107_v4, %v106_v3  ;;  %v854_v10 = vld [vmem:[#allocation5 + $0x38] sm:$0xff]   ;;  %758 = vmatprep.subr.bf16.mxu0 %v853_v8  ;;  %v856_v13 = vld [vmem:[#allocation5 + $0x30] sm:$0xff]   ;;  %v859_v16 = vld [vmem:[#allocation5 + $0x60] sm:$0xff]  }
  0x42   :  { %v113_v12 = vadd.f32 %v109_v7, %v108_v6  ;;  %759 = vmatpush3.bf16.msra.mxu0 %v854_v10  ;;  %v860_v17 = vld [vmem:[#allocation5 + $0x20] sm:$0xff]   ;;  %v861_v18 = vld [vmem:[#allocation5 + $0x58] sm:$0xff]   ;;  %v863_v20 = vld [vmem:[#allocation5 + $0x50] sm:$0xff]  }
  0x43   :  { %111 = vadd.xlane.f32.xlu0 %v110_v9  ;;  %760 = vmatprep.subr.bf16.mxu0 %v855_v11  ;;  %v862_v19 = vld [vmem:[#allocation5 + $0x18] sm:$0xff]   ;;  %v864_v21 = vld [vmem:[#allocation5 + $0x10] sm:$0xff]   ;;  %v865_v22 = vld [vmem:[#allocation5 + $0x48] sm:$0xff]  }
  0x44   :  { %v866_v23 = vld [vmem:[#allocation5 + $0x8] sm:$0xff]   ;;  %v867_v24 = vld [vmem:[#allocation5 + $0x40] sm:$0xff]   ;;  %v869_v26 = vld [vmem:[#allocation7 + $0x38] sm:$0xff]  }
  0x45   :  { %v868_v25 = vld [vmem:[#allocation5] sm:$0xff]   ;;  %799 = vmatpush3.bf16.msra.mxu1 %v869_v26  ;;  %v870_v28 = vld [vmem:[#allocation7 + $0x30] sm:$0xff]   ;;  %v871_v29 = vld [vmem:[#allocation7 + $0x28] sm:$0xff]  }
  0x46   :  { %761 = vmatpush3.bf16.msra.mxu0 %v856_v13  ;;  %800 = vmatprep.subr.bf16.mxu1 %v1052_v27  ;;  %v872_v30 = vld [vmem:[#allocation7 + $0x20] sm:$0xff]   ;;  %v873_v43 = vld [vmem:[#allocation7 + $0x18] sm:$0xff]   ;;  %v874_v44 = vld [vmem:[#allocation7 + $0x10] sm:$0xff]  }
  0x47   :  { %114 = vadd.xlane.f32.xlu0 %v113_v12  ;;  %762 = vmatprep.subr.bf16.mxu0 %v857_v14  ;;  %v875_v45 = vld [vmem:[#allocation7 + $0x8] sm:$0xff]   ;;  %v876_v46 = vld [vmem:[#allocation7] sm:$0xff]   ;;  %v877_v47 = vld [vmem:[#allocation8 + $0x38] sm:$0xff]  }
  0x48   :  { %v878_v48 = vld [vmem:[#allocation8 + $0x30] sm:$0xff]   ;;  %v879_v49 = vld [vmem:[#allocation8 + $0x28] sm:$0xff]   ;;  %v880_v50 = vld [vmem:[#allocation8 + $0x20] sm:$0xff]  }
  0x49   :  { %801 = vmatpush3.bf16.msra.mxu1 %v870_v28  ;;  %v881_v51 = vld [vmem:[#allocation8 + $0x18] sm:$0xff]   ;;  %v882_v52 = vld [vmem:[#allocation8 + $0x10] sm:$0xff]   ;;  %v707_v56 = vld [vmem:[%s1191_s2] ss:$0 sm:$0xff] }
  0x4a   :  { %763 = vmatpush3.bf16.msra.mxu0 %v858_v15  ;;  %802 = vmatprep.subr.bf16.mxu1 %v1052_v27  ;;  %v885_v3 = vld [vmem:[#allocation10 + $0x70] ss:$8 sps:$4 sm:$0xff]   ;;  %v887_v4 = vld [vmem:[#allocation10 + $0x74] ss:$8 sps:$4 sm:$0xff]   ;;  %v888_v6 = vld [vmem:[#allocation10 + $0x60] ss:$8 sps:$4 sm:$0xff]  }
  0x4b   :  { %764 = vmatprep.subr.bf16.mxu0 %v859_v16  ;;  %v893_v7 = vld [vmem:[#allocation10 + $0x54] ss:$8 sps:$4 sm:$0xff]   ;;  %v891_v8 = vld [vmem:[#allocation10 + $0x50] ss:$8 sps:$4 sm:$0xff]   ;;  %v896_v9 = vld [vmem:[#allocation10 + $0x44] ss:$8 sps:$4 sm:$0xff]  }
  0x4c   :  { %v894_v10 = vld [vmem:[#allocation10 + $0x40] ss:$8 sps:$4 sm:$0xff]   ;;  %v899_v11 = vld [vmem:[#allocation10 + $0x34] ss:$8 sps:$4 sm:$0xff]   ;;  %v897_v12 = vld [vmem:[#allocation10 + $0x30] ss:$8 sps:$4 sm:$0xff]  }
  0x4d   :  { %803 = vmatpush3.bf16.msra.mxu1 %v871_v29  ;;  %v902_v13 = vld [vmem:[#allocation10 + $0x24] ss:$8 sps:$4 sm:$0xff]   ;;  %v900_v14 = vld [vmem:[#allocation10 + $0x20] ss:$8 sps:$4 sm:$0xff]  }
  0x4e   :  { %765 = vmatpush3.bf16.msra.mxu0 %v860_v17  ;;  %804 = vmatprep.subr.bf16.mxu1 %v1052_v27  ;;  %v724_v16 = vld [vmem:[%s1193_s4] ss:$0 sm:$0xff] }
  0x4f   :  { %766 = vmatprep.subr.bf16.mxu0 %v861_v18  ;;  %v906_v26 = vld [vmem:[#allocation10] ss:$8 sps:$4 sm:$0xff]  }
  0x50   :  { %v733_v28 = vld [vmem:[%s1195_s6] ss:$0 sm:$0xff]  ;;  %s1055_s6 = smov [#allocation11]  }
  0x51   :  { %805 = vmatpush3.bf16.msra.mxu1 %v872_v30  ;;  %s693_s20 = sshll.u32 %s1055_s6, 4  ;;  %s694_s20 = int_to_ptr.vmem [resolvable:$true] %s693_s20 }
  0x52   :  { %767 = vmatpush3.bf16.msra.mxu0 %v862_v19  ;;  %806 = vmatprep.subr.bf16.mxu1 %v1052_v27  ;;  %s1013_s21 = scalar_lea.vmem %s694_s20, 512  ;;  %p1018_p12 = scmp.lt.s32.totalorder %s694_s20, %s694_s20 }
  0x53   :  { %768 = vmatprep.subr.bf16.mxu0 %v863_v20  ;;  %p1014_p11 = scmp.ne.s32.totalorder %s694_s20, %s1013_s21  ;;  %p1019_p13 = scmp.lt.s32.totalorder %s1013_s21, %s1013_s21 }
  0x55   :  { %807 = vmatpush3.bf16.msra.mxu1 %v873_v43  ;;  %p1020_p0 = por %p1019_p13, %p1018_p12 }
  0x56   :  { %769 = vmatpush3.bf16.msra.mxu0 %v864_v21  ;;  %808 = vmatprep.subr.bf16.mxu1 %v1052_v27 }
  0x57   :  { %770 = vmatprep.subr.bf16.mxu0 %v865_v22  ;;  %p1021_p1 = pnand %p1020_p0, %p1014_p11 }
  0x59   :  { %809 = vmatpush3.bf16.msra.mxu1 %v874_v44 }
  0x5a   :  { %771 = vmatpush3.bf16.msra.mxu0 %v866_v23  ;;  %810 = vmatprep.subr.bf16.mxu1 %v1052_v27  ;;  %v905_v23 = vld [vmem:[#allocation10 + $0x14] ss:$8 sps:$4 sm:$0xff]  }
  0x5b   :  { %772 = vmatprep.subr.bf16.mxu0 %v867_v24  ;;  %v903_v24 = vld [vmem:[#allocation10 + $0x10] ss:$8 sps:$4 sm:$0xff]  }
  0x5d   :  { %811 = vmatpush3.bf16.msra.mxu1 %v875_v45 }
  0x5e   :  { %773 = vmatpush3.bf16.msra.mxu0 %v868_v25  ;;  %812 = vmatprep.subr.bf16.mxu1 %v1052_v27  ;;  %v908_v25 = vld [vmem:[#allocation10 + $0x4] ss:$8 sps:$4 sm:$0xff]  }
  0x5f   :  { %818 = vmatprep.subr.bf16.mxu0 %v1052_v27 }
  0x61   :  { %813 = vmatpush3.bf16.msra.mxu1 %v876_v46 }
  0x62   :  { %641 = vmatprep.subr.bf16.mxu1 %v887_v4 }
  0xcc   :  { %v112_v31 = vpop.xlane.xlu0 %111 }
  0xcd   :  { %v116_v32 = vmax.f32 %v112_v31, 1e-24 }
  0xcf   :  { %909 = vrsqrt.f32 %v116_v32 }
  0xd0   :  { %v115_v33 = vpop.xlane.xlu0 %114 }
  0xd1   :  { %v117_v34 = vmax.f32 %v115_v33, 1e-24 }
  0xd3   :  { %911 = vrsqrt.f32 %v117_v34 }
  0xdc   :  { %v910_v35 = vpop.eup %909 }
  0xdd   :  { %v121_v37 = vmul.f32 %v910_v35, %v1135_v1  ;;  %v120_v39 = vmul.f32 %v910_v35, %v1133_v0  ;;  %v883_v1 = vld [vmem:[#allocation8 + $0x8] sm:$0xff]  }
  0xe0   :  { %v912_v36 = vpop.eup %911 }
  0xe1   :  { %v123_v38 = vmul.f32 %v912_v36, %v1143_v5  ;;  %v122_v40 = vmul.f32 %v912_v36, %v1137_v2  ;;  %v884_v2 = vld [vmem:[#allocation8] sm:$0xff]  }
  0xe2   :  { %v890_v5 = vld [vmem:[#allocation10 + $0x64] ss:$8 sps:$4 sm:$0xff]  }
  0xe3   :  { %v125_v41 = vpack.c.bf16 %v123_v38, %v121_v37  ;;  %v124_v42 = vpack.c.bf16 %v122_v40, %v120_v39  ;;  %v551_v38 = vlaneseq }
  0xe5   :  { %293 = vmatprep.mubr.bf16.mxu0 %v125_v41  ;;  %v552_v39 = vshrl.u32 %v551_v38, 7  ;;  %v549_v41 = vld [vmem:[%s1197_s8] sm:$0x3] }
  0xe6   :  { %294 = vmatmul.mubr.bf16.vlgmr.msra.gmra.mxu0 %v124_v42 }
  0xe7   :  { %834 = vmatprep.mubr.msk.bf16.mxu0 %vm1053_vm0, %v1052_v27  ;;  %819 = vmatpush3.bf16.msra.mxu0 %v877_v47  ;;  %v553_v40 = vsub.s32 0, %v552_v39  ;;  %v557_v42 = vsub.s32 1, %v552_v39 }
  0xe8   :  { %820 = vmatprep.subr.bf16.mxu0 %v1052_v27 }
  0xe9   :  { %v554_v43 = vrot.slane %v549_v41, %v553_v40  ;;  %v558_v44 = vrot.slane %v549_v41, %v557_v42 }
  0xeb   :  { %821 = vmatpush3.bf16.msra.mxu0 %v878_v48 }
  0xec   :  { %822 = vmatprep.subr.bf16.mxu0 %v1052_v27 }
  0xef   :  { %823 = vmatpush3.bf16.msra.mxu0 %v879_v49 }
  0xf0   :  { %824 = vmatprep.subr.bf16.mxu0 %v1052_v27 }
  0xf3   :  { %825 = vmatpush3.bf16.msra.mxu0 %v880_v50 }
  0xf4   :  { %826 = vmatprep.subr.bf16.mxu0 %v1052_v27 }
  0xf7   :  { %827 = vmatpush3.bf16.msra.mxu0 %v881_v51 }
  0xf8   :  { %828 = vmatprep.subr.bf16.mxu0 %v1052_v27 }
  0xfb   :  { %829 = vmatpush3.bf16.msra.mxu0 %v882_v52 }
  0xfc   :  { %830 = vmatprep.subr.bf16.mxu0 %v1052_v27 }
  0xff   :  { %831 = vmatpush3.bf16.msra.mxu0 %v883_v1 }
 0x100   :  { %832 = vmatprep.subr.bf16.mxu0 %v1052_v27  ;;  %v1054_v27 = vmov 0  }
 0x103   :  { %833 = vmatpush3.bf16.msra.mxu0 %v884_v2 }
 0x1a6   :  { %v774_v53 = vpop.f32.mrf.mxu0 }
 0x1a8   :  { %v775_v54 = vpop.f32.mrf.mxu0 }
 0x1a9   :  { %v776_v55 = vadd.f32 %v775_v54, %v774_v53 }
 0x1aa   :  { %v777_v57 = vpop.f32.mrf.mxu0 }
 0x1ab   :  { %v296_v59 = vadd.f32 %v776_v55, %v707_v56 }
 0x1ac   :  { %v778_v58 = vpop.f32.mrf.mxu0 }
 0x1ad   :  { %v779_v60 = vadd.f32 %v778_v58, %v777_v57  ;;  %v302_v62 = vmax.f32 %v296_v59, 0.0 }
 0x1af   :  { %v299_v61 = vadd.f32 %v779_v60, %v707_v56 }
 0x1b1   :  { %v303_v63 = vmax.f32 %v299_v61, 0.0 }
 0x1b3   :  { %v304_v0 = vpack.c.bf16 %v303_v63, %v302_v62 }
 0x1b5   :  { %815 = vmatmul.mubr.bf16.vlgmr.msra.gmra.mxu1 %v304_v0 }
 0x1b6   :  { %642 = vmatpush1.bf16.msra.mxu1 %v885_v3  ;;  %673 = vmatprep.mubr.bf16.mxu1 %v1054_v27 }
 0x1b7   :  { %643 = vmatprep.subr.bf16.mxu1 %v890_v5 }
 0x1ba   :  { %644 = vmatpush1.bf16.msra.mxu1 %v888_v6 }
 0x1bb   :  { %645 = vmatprep.subr.bf16.mxu1 %v893_v7 }
 0x1be   :  { %646 = vmatpush1.bf16.msra.mxu1 %v891_v8 }
 0x1bf   :  { %647 = vmatprep.subr.bf16.mxu1 %v896_v9 }
 0x1c2   :  { %648 = vmatpush1.bf16.msra.mxu1 %v894_v10 }
 0x1c3   :  { %649 = vmatprep.subr.bf16.mxu1 %v899_v11 }
 0x1c6   :  { %650 = vmatpush1.bf16.msra.mxu1 %v897_v12 }
 0x1c7   :  { %651 = vmatprep.subr.bf16.mxu1 %v902_v13 }
 0x1ca   :  { %652 = vmatpush1.bf16.msra.mxu1 %v900_v14 }
 0x1cb   :  { %653 = vmatprep.subr.bf16.mxu1 %v905_v23 }
 0x1ce   :  { %654 = vmatpush1.bf16.msra.mxu1 %v903_v24 }
 0x1cf   :  { %655 = vmatprep.subr.bf16.mxu1 %v908_v25 }
 0x1d2   :  { %656 = vmatpush1.bf16.msra.mxu1 %v906_v26 }
 0x275   :  { %v410_v15 = vpop.f32.mrf.mxu1 }
 0x276   :  { %v411_v19 = vadd.f32 %v724_v16, %v410_v15 }
 0x277   :  { %v816_v17 = vpop.f32.mrf.mxu1 }
 0x279   :  { %v413_v18 = vpop.f32.mrf.mxu1 }
 0x27a   :  { %v414_v20 = vadd.f32 %v724_v16, %v413_v18 }
 0x27b   :  { %v817_v21 = vpop.f32.mrf.mxu1 }
 0x27c   :  { %v417_v22 = vpack.c.bf16 %v414_v20, %v411_v19 }
 0x27e   :  { %835 = vmatmul.mubr.bf16.vlgmr.msra.gmra.mxu0 %v417_v22 }
 0x33e   :  { %v523_v29 = vpop.f32.mrf.mxu0 }
 0x33f   :  { %v524_v31 = vadd.f32 %v733_v28, %v523_v29 }
 0x340   :  { %v836_v30 = vpop.f32.mrf.mxu0 }
 0x341   :  { %v530_v35 = vmax.f32 %v524_v31, 0.0 }
 0x342   :  { %v526_v32 = vpop.f32.mrf.mxu0 }
 0x343   :  { %v527_v33 = vadd.f32 %v733_v28, %v526_v32 }
 0x344   :  { %v837_v34 = vpop.f32.mrf.mxu0 }
 0x345   :  { %v531_v36 = vmax.f32 %v527_v33, 0.0 }
 0x347   :  { %v532_v37 = vpack.c.bf16 %v531_v36, %v530_v35 }
 0x349   :  { %674 = vmatmul.mubr.bf16.vlgmr.msra.gmra.mxu1 %v532_v37 }
 0x409   :  { %v675_v45 = vpop.f32.mrf.mxu1 }
 0x40a   :  { %v676_v46 = vadd.f32 %v675_v45, %v554_v43 }
 0x40b   :  { %v677_v47 = vpop.f32.mrf.mxu1 }
 0x40c   :  { %684 = vst [vmem:[#allocation11] sm:$0xff] %v676_v46  ;;  %v678_v48 = vadd.f32 %v677_v47, %v558_v44 }
 0x40d   :  { %v679_v49 = vpop.f32.mrf.mxu1 }
 0x40e   :  { %685 = vst [vmem:[#allocation11 + $0x8] sm:$0xff] %v678_v48  ;;  %v680_v50 = vadd.f32 %v679_v49, %v554_v43 }
 0x40f   :  { %v681_v51 = vpop.f32.mrf.mxu1 }
 0x410   :  { %686 = vst [vmem:[#allocation11 + $0x10] sm:$0xff] %v680_v50  ;;  %v682_v52 = vadd.f32 %v681_v51, %v558_v44 }
 0x412   :  { %687 = vst [vmem:[#allocation11 + $0x18] sm:$0xff] %v682_v52 }
 0x413   :  { %1024 = shalt.err (!%p1021_p1)
}
 0x414   :  { %699 = dma.vmem_to_hbm [thread:$0]  %s694_s20, 512, %s1198_s9, [#allocation4], %s1046_s23, %s1046_s23, %s1047_s24  }
 0x415   :  { %1039 = dma.done.wait [#allocation4], 512  }
 0x416   :  { %1040 = vsyncadd [#allocation4], 4294966784 }
 0x417   :  { %703 = vsyncpa [#allocation3], 1 }
 0x418   :  { %704 = vsyncpa [#allocation6], 1 }
 0x419   :  { %705 = vsyncpa [#allocation9], 1 }
 0x41a   :  { %706 = vsyncpa [#allocation4], 1 }

</bundles_post_ra>
